<compile_context>
chip_gen: v5e
topology: v5e:2x2
jax: 0.10.0
libtpu: 0.0.40
codegen_flags: <defaults>
</compile_context>

<pallas_src>
import functools

import jax
import jax.numpy as jnp
from jax.experimental import pallas as pl
from jax.experimental.pallas import tpu as pltpu

EPSILON = 0.05
NUM_ITERS = 3
_LANE = 128
_SUBLANE = 8
_NEG_FILL = -1e30          # pad logit value: exp(pad/eps - M) underflows to exactly 0
_FUSED_RANK_MAX_K = 512    # in-kernel ranking is O(Kp^2); fall back above this


def _round_up(x, m):
    return ((x + m - 1) // m) * m


def _sinkhorn_kernel(logits_ref, r_ref, out_ref, *, epsilon, num_iters,
                     n_samples, n_clusters, fused_rank):
    """exp/normalise + prior permutation + Sinkhorn sweeps, all in (Bp, Kp)."""
    f32 = jnp.float32
    Bp, Kp = out_ref.shape

    q = logits_ref[...].astype(f32) * f32(1.0 / epsilon)   # cast after load (bf16 ok)
    m = jnp.max(q)                                          # global max
    Q = jnp.exp(q - m)          # <= 1 everywhere; padded rows/cols exactly 0
    # NOTE: the reference's global `Q /= sum(Q)` is intentionally dropped: it is
    # absorbed exactly by the first `r / colsum(Q)` rescale (incl. the inf path).

    # --- per-cluster prior, permuted so the lightest cluster gets the smallest r
    if fused_rank:
        # Rank each real cluster by its column mass (identical ordering key to
        # the reference's argsort of Q.sum over samples) with an O(Kp^2)
        # compare-and-count, then gather the pre-sorted/clamped/normalised r by
        # rank.  All on one (Kp, Kp) tile -- no second HBM pass over logits.
        key = jnp.sum(Q, axis=0, keepdims=True)                        # (1, Kp)
        sub = jax.lax.broadcasted_iota(jnp.int32, (Kp, Kp), 0)         # j
        lane = jax.lax.broadcasted_iota(jnp.int32, (Kp, Kp), 1)        # k
        key_b = jnp.broadcast_to(key, (Kp, Kp))                        # key[k]
        # lane->sublane "transpose" of the key row via a masked lane reduce
        key_col = jnp.sum(jnp.where(sub == lane, key_b, f32(0.0)),
                          axis=1, keepdims=True)                       # key[j], (Kp,1)
        key_col_b = jnp.broadcast_to(key_col, (Kp, Kp))
        count = (sub < n_clusters) & ((key_col_b < key_b) |
                                      ((key_col_b == key_b) & (sub < lane)))
        rank = jnp.sum(jnp.where(count, f32(1.0), f32(0.0)),
                       axis=0, keepdims=True).astype(jnp.int32)        # (1, Kp)
        pick = sub == jnp.broadcast_to(rank, (Kp, Kp))                 # i == rank[k]
        r = jnp.sum(jnp.where(pick, jnp.broadcast_to(r_ref[...], (Kp, Kp)),
                              f32(0.0)), axis=0, keepdims=True)        # (1, Kp)
    else:
        r = r_ref[...]                            # (1, Kp), precomputed in wrapper

    c = f32(1.0 / n_samples)                      # uniform sample marginal
    if Bp == n_samples:
        def row_scale(row, num):
            return num / row                      # exact divide (matches reference)
    else:
        valid_row = jax.lax.broadcasted_iota(jnp.int32, (Bp, 1), 0) < n_samples
        def row_scale(row, num):
            # keep padded (all-zero) rows at exactly 0 instead of 0*inf = NaN
            return jnp.where(valid_row, num / row, f32(0.0))

    # --- Sinkhorn sweeps ------------------------------------------------------
    for it in range(num_iters):
        u = jnp.sum(Q, axis=0, keepdims=True)     # per-cluster mass (sublane reduce)
        u = r / u                                 # exact divide: 0 -> +inf
        inf_mask = jnp.isinf(u)                   # shoot_infs(u)
        u_z = jnp.where(inf_mask, f32(0.0), u)
        u = jnp.where(inf_mask, jnp.max(u_z), u_z)
        Q = Q * u                                 # rescale clusters (columns)
        if it + 1 < num_iters:
            # The last iteration's per-sample rescale cancels exactly against the
            # final row normalisation below, so it (and its reduce) is skipped.
            Q = Q * row_scale(jnp.sum(Q, axis=1, keepdims=True), c)

    # final: (Q_torch / colsum(Q_torch)).T  ==  Q / rowsum-over-clusters here
    out_ref[...] = Q * row_scale(jnp.sum(Q, axis=1, keepdims=True), f32(1.0))


def sinkhorn_knopp_prior_new(logits, prior_, *, num_iters=NUM_ITERS,
                             epsilon=EPSILON):
    B, K = logits.shape
    # keep logits at their native dtype (bf16 halves HBM read); cast in-kernel
    if logits.dtype not in (jnp.dtype(jnp.float32), jnp.dtype(jnp.bfloat16)):
        logits = logits.astype(jnp.float32)

    # --- tiny per-cluster prior prep in plain JAX (K scalars only) ------------
    prior = prior_.astype(jnp.float32)
    prior = prior / jnp.max(prior)
    r0 = prior * (B / K)                 # Q_torch.shape[1] / Q_torch.shape[0]

    Bp = max(_round_up(B, _SUBLANE), _SUBLANE)
    Kp = max(_round_up(K, _LANE), _LANE)
    fused_rank = Kp <= _FUSED_RANK_MAX_K

    if fused_rank:
        # The scatter r[argsort(cluster_mass)] = sort(r) happens inside the
        # kernel (rank from the first column-sum of Q); only the sorted,
        # clamped, normalised values are passed (clamp & sum commute with the
        # permutation, so this is exact).  Padded entries (1.0) are only ever
        # picked by all-zero padded clusters and are absorbed by shoot_infs.
        r_sorted = jnp.sort(r0)
        r_sorted = jnp.maximum(r_sorted, 1.0)
        r_sorted = r_sorted / jnp.sum(r_sorted)
        r_arg = jnp.pad(r_sorted, (0, Kp - K),
                        constant_values=1.0).reshape(Kp, 1)
    else:
        # TODO(synk): O(Kp^2) in-kernel ranking is capped at Kp <= 512; larger K
        # falls back to the wrapper argsort (one extra HBM pass over logits).
        key = jax.nn.logsumexp(logits.astype(jnp.float32) / epsilon, axis=0)
        order = jnp.argsort(key)
        r = r0.at[order].set(jnp.sort(r0))
        r = jnp.maximum(r, 1.0)
        r = r / jnp.sum(r)
        r_arg = jnp.pad(r, (0, Kp - K), constant_values=1.0).reshape(1, Kp)

    # pad to dense (sublane, lane) tiles; padded logits underflow to exactly 0
    logits_p = logits
    if (Bp, Kp) != (B, K):
        logits_p = jnp.pad(logits, ((0, Bp - B), (0, Kp - K)),
                           constant_values=_NEG_FILL)

    # --- generation-aware single-block VMEM budget ----------------------------
    in_bytes = jnp.dtype(logits_p.dtype).itemsize
    resident = Bp * Kp * (in_bytes + 4 + 4)               # logits + Q + out
    resident += (4 * Kp * Kp * 4) if fused_rank else 0    # ranking temporaries
    resident += 16 * (Bp + Kp) + (64 << 10)
    try:
        cap = int(getattr(pltpu.get_tpu_info(), "vmem_capacity_bytes", 64 << 20))
    except Exception:  # pragma: no cover - conservative fallback (v7x size)
        cap = 64 << 20
    headroom = 4 << 20
    if resident > cap - headroom:
        # TODO(synk): tile the B axis (grid + per-iteration column-sum
        # accumulator, or scaling-vector Sinkhorn with bf16-resident Q0 and a
        # dual-TensorCore split on v7x) instead of failing for very large B.
        raise NotImplementedError(
            f"single-block Sinkhorn needs ~{resident >> 20} MiB VMEM "
            f"(> {cap >> 20} MiB available); B-tiled path not implemented")
    vmem_limit = int(min(max(2 * resident, 32 << 20), cap - headroom))

    out = pl.pallas_call(
        functools.partial(_sinkhorn_kernel, epsilon=epsilon,
                          num_iters=num_iters, n_samples=B, n_clusters=K,
                          fused_rank=fused_rank),
        out_shape=jax.ShapeDtypeStruct((Bp, Kp), jnp.float32),
        # no grid: one whole-problem block, single-buffered (nothing to overlap
        # with, so no double-buffer VMEM overhead).
        in_specs=[pl.BlockSpec(memory_space=pltpu.MemorySpace.VMEM),
                  pl.BlockSpec(memory_space=pltpu.MemorySpace.VMEM)],
        out_specs=pl.BlockSpec(memory_space=pltpu.MemorySpace.VMEM),
        compiler_params=pltpu.CompilerParams(vmem_limit_bytes=vmem_limit),
    )(logits_p, r_arg)

    return out[:B, :K]


def _reference(logits, prior_, num_iters=NUM_ITERS, epsilon=EPSILON):
    """Pure-JAX transcription of the PyTorch module (sanity check only)."""
    prior = prior_ / jnp.max(prior_)
    q = logits / epsilon
    Q = jnp.exp(q - jnp.max(q)).T                     # (K, B)
    Q = Q / jnp.sum(Q)
    Kc, Bc = Q.shape
    c = jnp.ones((Bc,), jnp.float32) / Bc
    order = jnp.argsort(jnp.sum(Q, axis=1))
    r = prior * (Bc / Kc)
    r = r.at[order].set(jnp.sort(r))
    r = jnp.maximum(r, 1.0)
    r = r / jnp.sum(r)
    for _ in range(num_iters):
        u = jnp.sum(Q, axis=1)
        u = r / u
        mask = jnp.isinf(u)
        uz = jnp.where(mask, 0.0, u)
        u = jnp.where(mask, jnp.max(uz), uz)
        Q = Q * u[:, None]
        Q = Q * (c / jnp.sum(Q, axis=0))[None, :]
    return (Q / jnp.sum(Q, axis=0, keepdims=True)).T


if __name__ == "__main__":
    key = jax.random.PRNGKey(0)
    k1, k2, k3 = jax.random.split(key, 3)

    # case 1: f32 logits, sublane-aligned batch
    B, K = 32, 16
    logits = jax.random.normal(k1, (B, K), dtype=jnp.float32)
    prior_ = jax.random.uniform(k2, (K,), dtype=jnp.float32,
                                minval=0.1, maxval=1.0)
    out = jax.block_until_ready(sinkhorn_knopp_prior_new(logits, prior_))
    assert out.shape == (B, K) and out.dtype == jnp.float32
    assert bool(jnp.all(jnp.isfinite(out)))
    assert bool(jnp.allclose(jnp.sum(out, axis=1), 1.0, atol=1e-4))
    ref = _reference(logits, prior_)
    assert bool(jnp.allclose(out, ref, rtol=5e-3, atol=1e-5))

    # case 2: bf16 logits + ragged batch (exercises native-dtype path & row pad)
    B2, K2 = 13, 16
    logits2 = jax.random.normal(k3, (B2, K2), dtype=jnp.float32).astype(jnp.bfloat16)
    out2 = jax.block_until_ready(sinkhorn_knopp_prior_new(logits2, prior_))
    assert out2.shape == (B2, K2) and out2.dtype == jnp.float32
    assert bool(jnp.all(jnp.isfinite(out2)))
    assert bool(jnp.allclose(jnp.sum(out2, axis=1), 1.0, atol=1e-4))
    ref2 = _reference(logits2.astype(jnp.float32), prior_)
    assert bool(jnp.allclose(out2, ref2, rtol=5e-3, atol=1e-5))

    print("KERNEL_OK")
</pallas_src>

<mosaic_0001>
module attributes {stable_mosaic.version = 11 : i64} {
  func.func @_sinkhorn_kernel(%arg0: memref<32x128xf32, #tpu.memory_space<vmem>>, %arg1: memref<128x1xf32, #tpu.memory_space<vmem>>, %arg2: memref<32x128xf32, #tpu.memory_space<vmem>>) attributes {dimension_semantics = [], scalar_prefetch = 0 : i64, scratch_operands = 0 : i64, tpu.core_type = #tpu.core_type<tc>} {
    %c0 = arith.constant 0 : index
    %c0_0 = arith.constant 0 : index
    %0 = vector.load %arg0[%c0, %c0_0] : memref<32x128xf32, #tpu.memory_space<vmem>>, vector<32x128xf32>
    %cst = arith.constant 2.000000e+01 : f32
    %1 = vector.broadcast %cst : f32 to vector<32x128xf32>
    %2 = arith.mulf %0, %1 : vector<32x128xf32>
    %3 = vector.shape_cast %2 : vector<32x128xf32> to vector<1x32x128xf32>
    %cst_1 = arith.constant dense<0xFF800000> : vector<1xf32>
    %4 = vector.multi_reduction <maximumf>, %3, %cst_1 [1, 2] : vector<1x32x128xf32> to vector<1xf32>
    %5 = vector.shape_cast %4 : vector<1xf32> to vector<1x1x1xf32>
    %6 = vector.extract %5[0, 0, 0] : f32 from vector<1x1x1xf32>
    %7 = vector.broadcast %6 : f32 to vector<32x128xf32>
    %8 = arith.subf %2, %7 : vector<32x128xf32>
    %9 = math.exp %8 : vector<32x128xf32>
    %cst_2 = arith.constant dense<0.000000e+00> : vector<128xf32>
    %10 = vector.multi_reduction <add>, %9, %cst_2 [0] : vector<32x128xf32> to vector<128xf32>
    %11 = vector.shape_cast %10 : vector<128xf32> to vector<1x128xf32>
    %12 = tpu.iota {dimensions = array<i32: 0>} : vector<128x128xi32>
    %13 = tpu.iota {dimensions = array<i32: 1>} : vector<128x128xi32>
    %14 = vector.shape_cast %11 : vector<1x128xf32> to vector<1x128xf32>
    %15 = vector.broadcast %14 : vector<1x128xf32> to vector<128x128xf32>
    %16 = arith.cmpi eq, %12, %13 : vector<128x128xi32>
    %cst_3 = arith.constant 0.000000e+00 : f32
    %17 = vector.broadcast %cst_3 : f32 to vector<128x128xf32>
    %18 = arith.select %16, %15, %17 : vector<128x128xi1>, vector<128x128xf32>
    %cst_4 = arith.constant dense<0.000000e+00> : vector<128xf32>
    %19 = vector.multi_reduction <add>, %18, %cst_4 [1] : vector<128x128xf32> to vector<128xf32>
    %20 = vector.shape_cast %19 : vector<128xf32> to vector<128x1xf32>
    %21 = vector.shape_cast %20 : vector<128x1xf32> to vector<128x1xf32>
    %22 = vector.broadcast %21 : vector<128x1xf32> to vector<128x128xf32>
    %c16_i32 = arith.constant 16 : i32
    %23 = vector.broadcast %c16_i32 : i32 to vector<128x128xi32>
    %24 = arith.cmpi slt, %12, %23 : vector<128x128xi32>
    %25 = arith.cmpf olt, %22, %15 : vector<128x128xf32>
    %26 = arith.cmpf oeq, %22, %15 : vector<128x128xf32>
    %27 = arith.cmpi slt, %12, %13 : vector<128x128xi32>
    %28 = arith.andi %26, %27 : vector<128x128xi1>
    %29 = arith.ori %25, %28 : vector<128x128xi1>
    %30 = arith.andi %24, %29 : vector<128x128xi1>
    %cst_5 = arith.constant 1.000000e+00 : f32
    %cst_6 = arith.constant 0.000000e+00 : f32
    %31 = vector.broadcast %cst_5 : f32 to vector<128x128xf32>
    %32 = vector.broadcast %cst_6 : f32 to vector<128x128xf32>
    %33 = arith.select %30, %31, %32 : vector<128x128xi1>, vector<128x128xf32>
    %cst_7 = arith.constant dense<0.000000e+00> : vector<128xf32>
    %34 = vector.multi_reduction <add>, %33, %cst_7 [0] : vector<128x128xf32> to vector<128xf32>
    %35 = vector.shape_cast %34 : vector<128xf32> to vector<1x128xf32>
    %36 = arith.fptosi %35 : vector<1x128xf32> to vector<1x128xi32>
    %37 = vector.shape_cast %36 : vector<1x128xi32> to vector<1x128xi32>
    %38 = vector.broadcast %37 : vector<1x128xi32> to vector<128x128xi32>
    %39 = arith.cmpi eq, %12, %38 : vector<128x128xi32>
    %c0_8 = arith.constant 0 : index
    %c0_9 = arith.constant 0 : index
    %40 = vector.load %arg1[%c0_8, %c0_9] : memref<128x1xf32, #tpu.memory_space<vmem>>, vector<128x1xf32>
    %41 = vector.shape_cast %40 : vector<128x1xf32> to vector<128x1xf32>
    %42 = vector.broadcast %41 : vector<128x1xf32> to vector<128x128xf32>
    %cst_10 = arith.constant 0.000000e+00 : f32
    %43 = vector.broadcast %cst_10 : f32 to vector<128x128xf32>
    %44 = arith.select %39, %42, %43 : vector<128x128xi1>, vector<128x128xf32>
    %cst_11 = arith.constant dense<0.000000e+00> : vector<128xf32>
    %45 = vector.multi_reduction <add>, %44, %cst_11 [0] : vector<128x128xf32> to vector<128xf32>
    %46 = vector.shape_cast %45 : vector<128xf32> to vector<1x128xf32>
    %cst_12 = arith.constant dense<0.000000e+00> : vector<128xf32>
    %47 = vector.multi_reduction <add>, %9, %cst_12 [0] : vector<32x128xf32> to vector<128xf32>
    %48 = vector.shape_cast %47 : vector<128xf32> to vector<1x128xf32>
    %49 = arith.divf %46, %48 : vector<1x128xf32>
    %50 = math.absf %49 : vector<1x128xf32>
    %cst_13 = arith.constant 0x7F800000 : f32
    %51 = vector.broadcast %cst_13 : f32 to vector<1x128xf32>
    %52 = arith.cmpf oeq, %50, %51 : vector<1x128xf32>
    %cst_14 = arith.constant 0.000000e+00 : f32
    %53 = vector.broadcast %cst_14 : f32 to vector<1x128xf32>
    %54 = arith.select %52, %53, %49 : vector<1x128xi1>, vector<1x128xf32>
    %55 = vector.shape_cast %54 : vector<1x128xf32> to vector<1x1x128xf32>
    %cst_15 = arith.constant dense<0xFF800000> : vector<1xf32>
    %56 = vector.multi_reduction <maximumf>, %55, %cst_15 [1, 2] : vector<1x1x128xf32> to vector<1xf32>
    %57 = vector.shape_cast %56 : vector<1xf32> to vector<1x1x1xf32>
    %58 = vector.extract %57[0, 0, 0] : f32 from vector<1x1x1xf32>
    %59 = vector.broadcast %58 : f32 to vector<1x128xf32>
    %60 = arith.select %52, %59, %54 : vector<1x128xi1>, vector<1x128xf32>
    %61 = vector.broadcast %60 : vector<1x128xf32> to vector<32x128xf32>
    %62 = arith.mulf %9, %61 : vector<32x128xf32>
    %cst_16 = arith.constant dense<0.000000e+00> : vector<32xf32>
    %63 = vector.multi_reduction <add>, %62, %cst_16 [1] : vector<32x128xf32> to vector<32xf32>
    %64 = vector.shape_cast %63 : vector<32xf32> to vector<32x1xf32>
    %cst_17 = arith.constant 3.125000e-02 : f32
    %65 = vector.broadcast %cst_17 : f32 to vector<32x1xf32>
    %66 = arith.divf %65, %64 : vector<32x1xf32>
    %67 = vector.broadcast %66 : vector<32x1xf32> to vector<32x128xf32>
    %68 = arith.mulf %62, %67 : vector<32x128xf32>
    %cst_18 = arith.constant dense<0.000000e+00> : vector<128xf32>
    %69 = vector.multi_reduction <add>, %68, %cst_18 [0] : vector<32x128xf32> to vector<128xf32>
    %70 = vector.shape_cast %69 : vector<128xf32> to vector<1x128xf32>
    %71 = arith.divf %46, %70 : vector<1x128xf32>
    %72 = math.absf %71 : vector<1x128xf32>
    %cst_19 = arith.constant 0x7F800000 : f32
    %73 = vector.broadcast %cst_19 : f32 to vector<1x128xf32>
    %74 = arith.cmpf oeq, %72, %73 : vector<1x128xf32>
    %cst_20 = arith.constant 0.000000e+00 : f32
    %75 = vector.broadcast %cst_20 : f32 to vector<1x128xf32>
    %76 = arith.select %74, %75, %71 : vector<1x128xi1>, vector<1x128xf32>
    %77 = vector.shape_cast %76 : vector<1x128xf32> to vector<1x1x128xf32>
    %cst_21 = arith.constant dense<0xFF800000> : vector<1xf32>
    %78 = vector.multi_reduction <maximumf>, %77, %cst_21 [1, 2] : vector<1x1x128xf32> to vector<1xf32>
    %79 = vector.shape_cast %78 : vector<1xf32> to vector<1x1x1xf32>
    %80 = vector.extract %79[0, 0, 0] : f32 from vector<1x1x1xf32>
    %81 = vector.broadcast %80 : f32 to vector<1x128xf32>
    %82 = arith.select %74, %81, %76 : vector<1x128xi1>, vector<1x128xf32>
    %83 = vector.broadcast %82 : vector<1x128xf32> to vector<32x128xf32>
    %84 = arith.mulf %68, %83 : vector<32x128xf32>
    %cst_22 = arith.constant dense<0.000000e+00> : vector<32xf32>
    %85 = vector.multi_reduction <add>, %84, %cst_22 [1] : vector<32x128xf32> to vector<32xf32>
    %86 = vector.shape_cast %85 : vector<32xf32> to vector<32x1xf32>
    %cst_23 = arith.constant 3.125000e-02 : f32
    %87 = vector.broadcast %cst_23 : f32 to vector<32x1xf32>
    %88 = arith.divf %87, %86 : vector<32x1xf32>
    %89 = vector.broadcast %88 : vector<32x1xf32> to vector<32x128xf32>
    %90 = arith.mulf %84, %89 : vector<32x128xf32>
    %cst_24 = arith.constant dense<0.000000e+00> : vector<128xf32>
    %91 = vector.multi_reduction <add>, %90, %cst_24 [0] : vector<32x128xf32> to vector<128xf32>
    %92 = vector.shape_cast %91 : vector<128xf32> to vector<1x128xf32>
    %93 = arith.divf %46, %92 : vector<1x128xf32>
    %94 = math.absf %93 : vector<1x128xf32>
    %cst_25 = arith.constant 0x7F800000 : f32
    %95 = vector.broadcast %cst_25 : f32 to vector<1x128xf32>
    %96 = arith.cmpf oeq, %94, %95 : vector<1x128xf32>
    %cst_26 = arith.constant 0.000000e+00 : f32
    %97 = vector.broadcast %cst_26 : f32 to vector<1x128xf32>
    %98 = arith.select %96, %97, %93 : vector<1x128xi1>, vector<1x128xf32>
    %99 = vector.shape_cast %98 : vector<1x128xf32> to vector<1x1x128xf32>
    %cst_27 = arith.constant dense<0xFF800000> : vector<1xf32>
    %100 = vector.multi_reduction <maximumf>, %99, %cst_27 [1, 2] : vector<1x1x128xf32> to vector<1xf32>
    %101 = vector.shape_cast %100 : vector<1xf32> to vector<1x1x1xf32>
    %102 = vector.extract %101[0, 0, 0] : f32 from vector<1x1x1xf32>
    %103 = vector.broadcast %102 : f32 to vector<1x128xf32>
    %104 = arith.select %96, %103, %98 : vector<1x128xi1>, vector<1x128xf32>
    %105 = vector.broadcast %104 : vector<1x128xf32> to vector<32x128xf32>
    %106 = arith.mulf %90, %105 : vector<32x128xf32>
    %cst_28 = arith.constant dense<0.000000e+00> : vector<32xf32>
    %107 = vector.multi_reduction <add>, %106, %cst_28 [1] : vector<32x128xf32> to vector<32xf32>
    %108 = vector.shape_cast %107 : vector<32xf32> to vector<32x1xf32>
    %cst_29 = arith.constant 1.000000e+00 : f32
    %109 = vector.broadcast %cst_29 : f32 to vector<32x1xf32>
    %110 = arith.divf %109, %108 : vector<32x1xf32>
    %111 = vector.broadcast %110 : vector<32x1xf32> to vector<32x128xf32>
    %112 = arith.mulf %106, %111 : vector<32x128xf32>
    %c0_30 = arith.constant 0 : index
    %c0_31 = arith.constant 0 : index
    %113 = vector.load %arg2[%c0_30, %c0_31] : memref<32x128xf32, #tpu.memory_space<vmem>>, vector<32x128xf32>
    tpu.vector_store %arg2[%c0_30, %c0_31], %112 {strides = array<i32>} : memref<32x128xf32, #tpu.memory_space<vmem>>, vector<32x128xf32>,
    return
  }
}

</mosaic_0001>

<bundles_post_ra>
// kernel: tpu_custom_call.1
= control target key start
LH: loop header
LB: loop body
LE: loop exit
PB: predicated region body
PF: predicated region fallthrough
CT: control target
= control target key end

     0   :  { %s1073_s0 = inlined_call_operand.vmem [shape: f32[32,128], index: 0, kind: input, shape index: {}]   ;;  %s1074_s1 = inlined_call_operand.vmem [shape: f32[128,1], index: 1, kind: input, shape index: {}]   ;;  %s1075_s2 = inlined_call_operand.hbm [shape: f32[32,128], index: 2, kind: output, shape index: {}]  }
   0x1   :  { %v12_v0 = vld [vmem:[%s1073_s0] sm:$0xff]  ;;  %v13_v1 = vld [vmem:[%s1073_s0 + $0x8] sm:$0xff]  ;;  %v14_v2 = vld [vmem:[%s1073_s0 + $0x10] sm:$0xff] }
   0x2   :  { %v15_v3 = vld [vmem:[%s1073_s0 + $0x18] sm:$0xff]  ;;  %v16_v4 = vmul.f32 20.0, %v12_v0  ;;  %v17_v5 = vmul.f32 20.0, %v13_v1  ;;  %v18_v6 = vmul.f32 20.0, %v14_v2 }
   0x3   :  { %7 = vsyncpa [#allocation3], 0  ;;  %v19_v7 = vmul.f32 20.0, %v15_v3  ;;  %v303_v11 = vld [vmem:[%s1074_s1] sm:$0xff]  ;;  %v304_v12 = vld [vmem:[%s1074_s1 + $0x8] sm:$0xff]  ;;  %v858_v13 = vmov 0   ;;  %v54_v43 = vlaneseq }
   0x4   :  { %v20_v8 = vmax.f32 %v16_v4, %v17_v5  ;;  %791 = vset.pattern.permute.xlu1 %v858_v13  ;;  %792 = vset.pattern.permute.xlu2 %v858_v13  ;;  %v310_v14 = vld [vmem:[%s1074_s1 + $0x38] sm:$0xff]  ;;  %v305_v22 = vld [vmem:[%s1074_s1 + $0x10] sm:$0xff]  ;;  %v307_v23 = vld [vmem:[%s1074_s1 + $0x20] sm:$0xff]  ;;  %s860_s22 = smov [#allocation2]   ;;  %s761_s26 = sshll.u32 %s1075_s2, 4  ;;  %s762_s26 = int_to_ptr.hbm [resolvable:$true] %s761_s26 }
   0x5   :  { %v21_v9 = vmax.f32 %v18_v6, %v19_v7  ;;  %321 = vperm.xlu1 %791, %v303_v11   ;;  %326 = vperm.xlu2 %792, %v304_v12   ;;  %v308_v24 = vld [vmem:[%s1074_s1 + $0x28] sm:$0xff]  ;;  %v309_v25 = vld [vmem:[%s1074_s1 + $0x30] sm:$0xff]  ;;  %v311_v27 = vld [vmem:[%s1074_s1 + $0x40] sm:$0xff]  ;;  %v932_v47 = vshrl.u32 %v54_v43, 7  ;;  %v72_v51 = vand.u32 127, %v54_v43  ;;  %s759_s23 = sshll.u32 %s860_s22, 4  ;;  %s760_s23 = int_to_ptr.vmem [resolvable:$true] %s759_s23 }
   0x6   :  { %793 = vset.pattern.permute.xlu0 %v858_v13  ;;  %v313_v36 = vld [vmem:[%s1074_s1 + $0x50] sm:$0xff]  ;;  %v316_v44 = vld [vmem:[%s1074_s1 + $0x68] sm:$0xff]  ;;  %v306_v57 = vld [vmem:[%s1074_s1 + $0x18] sm:$0xff]  ;;  %s861_s27 = smov 128   ;;  %s862_s28 = smov 8  }
   0x7   :  { %v22_v10 = vmax.f32 %v20_v8, %v21_v9  ;;  %v935_v50 = vadd.s32 8, %v932_v47  ;;  %vm73_vm1 = vcmp.eq.s32.totalorder %v932_v47, %v72_v51  ;;  %v312_v58 = vld [vmem:[%s1074_s1 + $0x48] sm:$0xff]  ;;  %v315_v59 = vld [vmem:[%s1074_s1 + $0x60] sm:$0xff]  ;;  %v314_v60 = vld [vmem:[%s1074_s1 + $0x58] sm:$0xff]  ;;  %vm185_vm5 = vcmp.lt.s32.totalorder %v932_v47, %v72_v51 }
   0x8   :  { %v318_v61 = vld [vmem:[%s1074_s1 + $0x78] sm:$0xff]  ;;  %v317_v62 = vld [vmem:[%s1074_s1 + $0x70] sm:$0xff] }
   0x9   :  { %23 = vmax.xlane.f32.xlu0 %v22_v10  ;;  %vm74_vm0 = vcmp.eq.s32.totalorder %v935_v50, %v72_v51  ;;  %vm186_vm2 = vcmp.lt.s32.totalorder %v935_v50, %v72_v51  ;;  %v65_v51 = vadd.s32 80, %v932_v47 }
   0xd   :  { %356 = vperm.xlu1 %791, %v310_v14   ;;  %331 = vperm.xlu2 %792, %v305_v22  }
  0x15   :  { %341 = vperm.xlu2 %792, %v307_v23   ;;  %v58_v23 = vadd.s32 24, %v932_v47 }
  0x1d   :  { %346 = vperm.xlu2 %792, %v308_v24   ;;  %v59_v24 = vadd.s32 32, %v932_v47 }
  0x25   :  { %351 = vperm.xlu2 %792, %v309_v25  }
  0x2d   :  { %361 = vperm.xlu2 %792, %v311_v27   ;;  %v60_v27 = vadd.s32 40, %v932_v47 }
  0x35   :  { %371 = vperm.xlu2 %792, %v313_v36  }
  0x3d   :  { %386 = vperm.xlu2 %792, %v316_v44   ;;  %v63_v44 = vadd.s32 64, %v932_v47 }
  0x5f   :  { %v327_v63 = vpop.permute.xlu2 %326 }
  0x67   :  { %v332_v1 = vpop.permute.xlu2 %331 }
  0x6f   :  { %v342_v3 = vpop.permute.xlu2 %341 }
  0x77   :  { %v322_v0 = vpop.permute.xlu1 %321  ;;  %v347_v10 = vpop.permute.xlu2 %346 }
  0x7c   :  { %v24_v15 = vpop.xlane.xlu0 %23 }
  0x7d   :  { %v25_v16 = vrot.slane %v24_v15, 4 }
  0x7f   :  { %v26_v17 = vmax.f32 %v24_v15, %v25_v16  ;;  %v961_v2 = vpop.permute.xlu1 %356  ;;  %v352_v16 = vpop.permute.xlu2 %351 }
  0x81   :  { %v27_v18 = vrot.slane %v26_v17, 2 }
  0x83   :  { %v28_v19 = vmax.f32 %v26_v17, %v27_v18 }
  0x85   :  { %v29_v20 = vrot.slane %v28_v19, 1 }
  0x87   :  { %v30_v21 = vmax.f32 %v28_v19, %v29_v20  ;;  %v57_v20 = vadd.s32 16, %v932_v47 }
  0x89   :  { %773 = vpush %v30_v21 }
  0xba   :  { %s774_s30 = spop %773 }
  0xbb   :  { %v32_v26 = vstv %s774_s30 }
  0xbc   :  { %v33_v28 = vsub.f32 %v16_v4, %v32_v26  ;;  %v34_v29 = vsub.f32 %v17_v5, %v32_v26  ;;  %v35_v30 = vsub.f32 %v18_v6, %v32_v26  ;;  %v36_v31 = vsub.f32 %v19_v7, %v32_v26 }
  0xbd   :  { %v859_v6 = vmov 0.0  }
  0xbe   :  { %v37_v32 = vmul.f32 1.442695, %v33_v28  ;;  %v39_v33 = vmul.f32 1.442695, %v34_v29  ;;  %v41_v34 = vmul.f32 1.442695, %v35_v30  ;;  %v362_v29 = vpop.permute.xlu2 %361 }
  0xbf   :  { %v43_v35 = vmul.f32 1.442695, %v36_v31 }
  0xc0   :  { %794 = vpow2.f32 %v37_v32 }
  0xc1   :  { %796 = vpow2.f32 %v39_v33  ;;  %v61_v33 = vadd.s32 48, %v932_v47 }
  0xc2   :  { %798 = vpow2.f32 %v41_v34 }
  0xc3   :  { %800 = vpow2.f32 %v43_v35 }
  0xc6   :  { %v917_v37 = vpop.eup %794 }
  0xc7   :  { %v919_v38 = vpop.eup %796 }
  0xc8   :  { %v45_v39 = vadd.f32 %v919_v38, %v917_v37  ;;  %v923_v40 = vpop.eup %798 }
  0xc9   :  { %v926_v42 = vpop.eup %800 }
  0xca   :  { %v46_v41 = vadd.f32 %v923_v40, %v45_v39  ;;  %v62_v39 = vadd.s32 56, %v932_v47 }
  0xcc   :  { %v47_v45 = vadd.f32 %v926_v42, %v46_v41 }
  0xce   :  { %v48_v46 = vrot.slane %v47_v45, 4 }
  0xd0   :  { %v49_v48 = vadd.f32 %v48_v46, %v47_v45 }
  0xd2   :  { %v50_v49 = vrot.slane %v49_v48, 2 }
  0xd4   :  { %v51_v52 = vadd.f32 %v50_v49, %v49_v48  ;;  %v64_v48 = vadd.s32 72, %v932_v47 }
  0xd6   :  { %v52_v53 = vrot.slane %v51_v52, 1 }
  0xd8   :  { %v939_v54 = vadd.f32 %v52_v53, %v51_v52  ;;  %v372_v53 = vpop.permute.xlu2 %371 }
  0xda   :  { %v90_v55 = vsel %vm74_vm0, %v939_v54, 0.0  ;;  %v89_v56 = vsel %vm73_vm1, %v939_v54, 0.0  ;;  %802 = vrcp.f32 %v939_v54 }
  0xdb   :  { %107 = vadd.xlane.f32.xlu1 %v90_v55  ;;  %105 = vadd.xlane.f32.xlu0 %v89_v56 }
  0xef   :  { %336 = vperm.xlu0 %793, %v306_v57  }
  0xf4   :  { %366 = vperm.xlu1 %791, %v312_v58  }
  0xf7   :  { %381 = vperm.xlu0 %793, %v315_v59  }
  0xfc   :  { %376 = vperm.xlu1 %791, %v314_v60   ;;  %v66_v60 = vadd.s32 88, %v932_v47 }
  0xff   :  { %396 = vperm.xlu0 %793, %v318_v61  }
 0x104   :  { %391 = vperm.xlu1 %791, %v317_v62  }
 0x14e   :  { %v108_v4 = vpop.xlane.xlu1 %107  ;;  %v106_v5 = vpop.xlane.xlu0 %105 }
 0x14f   :  { %vm154_vm3 = vcmp.lt.f32.partialorder %v108_v4, %v939_v54  ;;  %vm170_vm4 = vcmp.eq.f32.partialorder %v108_v4, %v939_v54  ;;  %vm169_vm6 = vcmp.eq.f32.partialorder %v106_v5, %v939_v54  ;;  %vm153_vm8 = vcmp.lt.f32.partialorder %v106_v5, %v939_v54 }
 0x150   :  { %vm202_vm7 = vmand %vm170_vm4, %vm186_vm2 }
 0x151   :  { %vm218_vm9 = vmor %vm154_vm3, %vm202_vm7 }
 0x152   :  { %v250_v7 = vsel %vm218_vm9, 1.0, %v859_v6  ;;  %vm201_vm10 = vmand %vm169_vm6, %vm185_vm5 }
 0x153   :  { %vm217_vm11 = vmor %vm153_vm8, %vm201_vm10 }
 0x154   :  { %v249_v8 = vsel %vm217_vm11, 1.0, %v859_v6  ;;  %v69_v6 = vadd.s32 112, %v932_v47 }
 0x155   :  { %v265_v9 = vadd.f32 %v250_v7, %v249_v8  ;;  %v387_v8 = vpop.permute.xlu2 %386 }
 0x157   :  { %v280_v11 = vrot.slane %v265_v9, 4 }
 0x159   :  { %v281_v12 = vadd.f32 %v280_v11, %v265_v9 }
 0x15b   :  { %v282_v13 = vrot.slane %v281_v12, 2 }
 0x15d   :  { %v283_v14 = vadd.f32 %v282_v13, %v281_v12 }
 0x15f   :  { %v284_v15 = vrot.slane %v283_v14, 1 }
 0x161   :  { %v285_v17 = vadd.f32 %v284_v15, %v283_v14  ;;  %v337_v32 = vpop.permute.xlu0 %336 }
 0x163   :  { %vm775_vm12 = vcmp.lt.s32.totalorder %v285_v17, 0  ;;  %v776_v18 = vceil.f32 %v285_v17  ;;  %v777_v19 = vfloor.f32 %v285_v17 }
 0x165   :  { %v778_v21 = vsel %vm775_vm12, %v776_v18, %v777_v19 }
 0x166   :  { %v970_v22 = vcvt.f32.s32 %v778_v21  ;;  %v367_v34 = vpop.permute.xlu1 %366 }
 0x168   :  { %vm287_vm13 = vcmp.eq.s32.totalorder %v932_v47, %v970_v22  ;;  %vm288_vm14 = vcmp.eq.s32.totalorder %v935_v50, %v970_v22  ;;  %vm289_vm15 = vcmp.eq.s32.totalorder %v57_v20, %v970_v22  ;;  %vm290_vm0 = vcmp.eq.s32.totalorder %v58_v23, %v970_v22 }
 0x169   :  { %v399_v25 = vsel %vm287_vm13, %v322_v0, 0.0  ;;  %v400_v26 = vsel %vm288_vm14, %v327_v63, 0.0  ;;  %v401_v30 = vsel %vm289_vm15, %v332_v1, 0.0  ;;  %vm291_vm1 = vcmp.eq.s32.totalorder %v59_v24, %v970_v22  ;;  %v382_v59 = vpop.permute.xlu0 %381 }
 0x16a   :  { %v415_v28 = vadd.f32 %v400_v26, %v399_v25  ;;  %v402_v35 = vsel %vm290_vm0, %v337_v32, 0.0  ;;  %vm292_vm2 = vcmp.eq.s32.totalorder %v60_v27, %v970_v22  ;;  %v403_v41 = vsel %vm291_vm1, %v342_v3, 0.0  ;;  %v803_v3 = vpop.eup %802 }
 0x16b   :  { %vm293_vm3 = vcmp.eq.s32.totalorder %v61_v33, %v970_v22  ;;  %v404_v45 = vsel %vm292_vm2, %v347_v10, 0.0  ;;  %vm294_vm4 = vcmp.eq.s32.totalorder %v62_v39, %v970_v22  ;;  %vm295_vm5 = vcmp.eq.s32.totalorder %v63_v44, %v970_v22 }
 0x16c   :  { %v416_v31 = vadd.f32 %v415_v28, %v401_v30  ;;  %v405_v49 = vsel %vm293_vm3, %v352_v16, 0.0  ;;  %v406_v52 = vsel %vm294_vm4, %v961_v2, 0.0  ;;  %vm296_vm6 = vcmp.eq.s32.totalorder %v64_v48, %v970_v22 }
 0x16d   :  { %v407_v57 = vsel %vm295_vm5, %v362_v29, 0.0  ;;  %vm297_vm7 = vcmp.eq.s32.totalorder %v65_v51, %v970_v22  ;;  %v408_v61 = vsel %vm296_vm6, %v367_v34, 0.0  ;;  %v67_v63 = vadd.s32 96, %v932_v47 }
 0x16e   :  { %v417_v36 = vadd.f32 %v416_v31, %v402_v35  ;;  %v377_v56 = vpop.permute.xlu1 %376  ;;  %v68_v0 = vadd.s32 104, %v932_v47  ;;  %v409_v1 = vsel %vm297_vm7, %v372_v53, 0.0  ;;  %vm298_vm8 = vcmp.eq.s32.totalorder %v66_v60, %v970_v22 }
 0x16f   :  { %v410_v4 = vsel %vm298_vm8, %v377_v56, 0.0  ;;  %vm299_vm9 = vcmp.eq.s32.totalorder %v67_v63, %v970_v22  ;;  %v70_v10 = vadd.s32 120, %v932_v47  ;;  %v437_v12 = vmul.f32 %v803_v3, %v939_v54 }
 0x170   :  { %v418_v43 = vadd.f32 %v417_v36, %v403_v41  ;;  %vm300_vm10 = vcmp.eq.s32.totalorder %v68_v0, %v970_v22  ;;  %v411_v7 = vsel %vm299_vm9, %v382_v59, 0.0  ;;  %vm301_vm11 = vcmp.eq.s32.totalorder %v69_v6, %v970_v22 }
 0x171   :  { %v412_v13 = vsel %vm300_vm10, %v387_v8, 0.0  ;;  %v397_v14 = vpop.permute.xlu0 %396  ;;  %vm302_vm12 = vcmp.eq.s32.totalorder %v70_v10, %v970_v22  ;;  %v438_v18 = vsub.f32 1.0, %v437_v12  ;;  %vm442_vm13 = vweird.f32 %v803_v3 }
 0x172   :  { %v419_v46 = vadd.f32 %v418_v43, %v404_v45  ;;  %v414_v19 = vsel %vm302_vm12, %v397_v14, 0.0  ;;  %v447_v26 = vand.u32 2147483648, %v939_v54  ;;  %vm441_vm14 = vweird.f32 %v939_v54 }
 0x173   :  { %v439_v23 = vmul.f32 %v803_v3, %v438_v18  ;;  %v445_v28 = vand.u32 2147483647, %v939_v54  ;;  %vm443_vm15 = vmor %vm441_vm14, %vm442_vm13 }
 0x174   :  { %v420_v50 = vadd.f32 %v419_v46, %v405_v49  ;;  %v448_v30 = vor.u32 1.1754944e-38, %v447_v26 }
 0x175   :  { %v440_v47 = vadd.f32 %v803_v3, %v439_v23  ;;  %vm446_vm0 = vcmp.eq.f32.partialorder %v445_v28, 8.507059e+37 }
 0x176   :  { %v421_v55 = vadd.f32 %v420_v50, %v406_v52  ;;  %v392_v11 = vpop.permute.xlu1 %391 }
 0x177   :  { %v413_v16 = vsel %vm301_vm11, %v392_v11, 0.0  ;;  %v444_v22 = vsel %vm443_vm15, %v803_v3, %v440_v47 }
 0x178   :  { %v422_v58 = vadd.f32 %v421_v55, %v407_v57  ;;  %v449_v32 = vsel %vm446_vm0, %v448_v30, %v444_v22 }
 0x17a   :  { %v423_v62 = vadd.f32 %v422_v58, %v408_v61 }
 0x17c   :  { %v424_v2 = vadd.f32 %v423_v62, %v409_v1 }
 0x17e   :  { %v425_v5 = vadd.f32 %v424_v2, %v410_v4 }
 0x180   :  { %v426_v9 = vadd.f32 %v425_v5, %v411_v7 }
 0x182   :  { %v427_v15 = vadd.f32 %v426_v9, %v412_v13 }
 0x184   :  { %v428_v17 = vadd.f32 %v427_v15, %v413_v16 }
 0x186   :  { %v429_v20 = vadd.f32 %v428_v17, %v414_v19 }
 0x188   :  { %v430_v21 = vrot.slane %v429_v20, 4 }
 0x18a   :  { %v431_v24 = vadd.f32 %v430_v21, %v429_v20 }
 0x18c   :  { %v432_v25 = vrot.slane %v431_v24, 2 }
 0x18e   :  { %v433_v27 = vadd.f32 %v432_v25, %v431_v24 }
 0x190   :  { %v434_v29 = vrot.slane %v433_v27, 1 }
 0x192   :  { %v1009_v31 = vadd.f32 %v434_v29, %v433_v27 }
 0x194   :  { %v450_v33 = vmul.f32 %v449_v32, %v1009_v31 }
 0x196   :  { %v451_v34 = vand.u32 2147483647, %v450_v33 }
 0x198   :  { %vm452_vm1 = vcmp.eq.f32.partialorder %v451_v34, inf }
 0x199   :  { %v453_v35 = vsel %vm452_vm1, 0.0, %v450_v33 }
 0x19a   :  { %454 = vmax.xlane.f32.xlu2 %v453_v35 }
 0x20d   :  { %v455_v36 = vpop.xlane.xlu2 %454 }
 0x20e   :  { %780 = vpush %v455_v36 }
 0x23f   :  { %s781_s1 = spop %780 }
 0x240   :  { %v457_v39 = vstv %s781_s1 }
 0x241   :  { %v458_v41 = vsel %vm452_vm1, %v457_v39, %v450_v33 }
 0x242   :  { %v1013_v54 = vmul.f32 %v923_v40, %v458_v41  ;;  %v1016_v43 = vmul.f32 %v919_v38, %v458_v41  ;;  %v1019_v44 = vmul.f32 %v917_v37, %v458_v41  ;;  %v1025_v45 = vmul.f32 %v926_v42, %v458_v41 }
 0x244   :  { %467 = vadd.xlane.f32.xlu2 %v1013_v54  ;;  %465 = vadd.xlane.f32.xlu0 %v1016_v43 }
 0x245   :  { %463 = vadd.xlane.f32.xlu1 %v1019_v44 }
 0x24d   :  { %469 = vadd.xlane.f32.xlu1 %v1025_v45 }
 0x2b7   :  { %v468_v46 = vpop.xlane.xlu2 %467  ;;  %v466_v40 = vpop.xlane.xlu0 %465 }
 0x2b8   :  { %804 = vrcp.f32 %v468_v46  ;;  %v464_v48 = vpop.xlane.xlu1 %463  ;;  %vm506_vm2 = vweird.f32 %v468_v46  ;;  %v495_v56 = vand.u32 2147483647, %v466_v40  ;;  %v497_v58 = vand.u32 2147483648, %v466_v40 }
 0x2b9   :  { %806 = vrcp.f32 %v466_v40  ;;  %v512_v60 = vand.u32 2147483648, %v468_v46  ;;  %v482_v62 = vand.u32 2147483648, %v464_v48  ;;  %v480_v1 = vand.u32 2147483647, %v464_v48 }
 0x2ba   :  { %808 = vrcp.f32 %v464_v48  ;;  %v510_v3 = vand.u32 2147483647, %v468_v46  ;;  %vm491_vm7 = vweird.f32 %v466_v40  ;;  %vm496_vm9 = vcmp.eq.f32.partialorder %v495_v56, 8.507059e+37 }
 0x2bb   :  { %v498_v6 = vor.u32 1.1754944e-38, %v497_v58  ;;  %vm476_vm10 = vweird.f32 %v464_v48  ;;  %v483_v10 = vor.u32 1.1754944e-38, %v482_v62  ;;  %v513_v12 = vor.u32 1.1754944e-38, %v512_v60 }
 0x2bc   :  { %vm481_vm12 = vcmp.eq.f32.partialorder %v480_v1, 8.507059e+37  ;;  %vm511_vm13 = vcmp.eq.f32.partialorder %v510_v3, 8.507059e+37 }
 0x2be   :  { %v805_v38 = vpop.eup %804 }
 0x2bf   :  { %v807_v37 = vpop.eup %806  ;;  %v502_v49 = vmul.f32 %v805_v38, %v468_v46  ;;  %vm507_vm3 = vweird.f32 %v805_v38 }
 0x2c0   :  { %v809_v50 = vpop.eup %808  ;;  %v487_v51 = vmul.f32 %v807_v37, %v466_v40  ;;  %v470_v52 = vpop.xlane.xlu1 %469  ;;  %vm492_vm4 = vweird.f32 %v807_v37  ;;  %vm1029_vm6 = vmor %vm506_vm2, %vm507_vm3 }
 0x2c1   :  { %v503_v53 = vsub.f32 1.0, %v502_v49  ;;  %v472_v55 = vmul.f32 %v809_v50, %v464_v48  ;;  %810 = vrcp.f32 %v470_v52  ;;  %vm477_vm5 = vweird.f32 %v809_v50  ;;  %vm493_vm8 = vmor %vm491_vm7, %vm492_vm4 }
 0x2c2   :  { %v488_v42 = vsub.f32 1.0, %v487_v51  ;;  %vm478_vm11 = vmor %vm476_vm10, %vm477_vm5  ;;  %v527_v20 = vand.u32 2147483648, %v470_v52  ;;  %v525_v24 = vand.u32 2147483647, %v470_v52  ;;  %vm521_vm15 = vweird.f32 %v470_v52 }
 0x2c3   :  { %v504_v57 = vmul.f32 %v805_v38, %v503_v53  ;;  %v473_v59 = vsub.f32 1.0, %v472_v55 }
 0x2c4   :  { %v489_v61 = vmul.f32 %v807_v37, %v488_v42  ;;  %v528_v27 = vor.u32 1.1754944e-38, %v527_v20  ;;  %vm526_vm1 = vcmp.eq.f32.partialorder %v525_v24, 8.507059e+37 }
 0x2c5   :  { %v505_v63 = vadd.f32 %v805_v38, %v504_v57  ;;  %v474_v0 = vmul.f32 %v809_v50, %v473_v59 }
 0x2c6   :  { %v490_v4 = vadd.f32 %v807_v37, %v489_v61 }
 0x2c7   :  { %v811_v5 = vpop.eup %810  ;;  %v475_v7 = vadd.f32 %v809_v50, %v474_v0  ;;  %v509_v8 = vsel %vm1029_vm6, %v805_v38, %v505_v63 }
 0x2c8   :  { %v494_v9 = vsel %vm493_vm8, %v807_v37, %v490_v4  ;;  %v517_v11 = vmul.f32 %v811_v5, %v470_v52  ;;  %v514_v18 = vsel %vm511_vm13, %v513_v12, %v509_v8  ;;  %vm522_vm14 = vweird.f32 %v811_v5 }
 0x2c9   :  { %v499_v13 = vsel %vm496_vm9, %v498_v6, %v494_v9  ;;  %v479_v14 = vsel %vm478_vm11, %v809_v50, %v475_v7  ;;  %v515_v47 = vmul.f32 0.03125, %v514_v18  ;;  %vm523_vm0 = vmor %vm521_vm15, %vm522_vm14 }
 0x2ca   :  { %v500_v15 = vmul.f32 0.03125, %v499_v13  ;;  %v484_v16 = vsel %vm481_vm12, %v483_v10, %v479_v14  ;;  %v518_v17 = vsub.f32 1.0, %v517_v11 }
 0x2cb   :  { %v485_v19 = vmul.f32 0.03125, %v484_v16  ;;  %v533_v30 = vmul.f32 %v515_v47, %v1013_v54 }
 0x2cc   :  { %v532_v21 = vmul.f32 %v500_v15, %v1016_v43  ;;  %v519_v23 = vmul.f32 %v811_v5, %v518_v17 }
 0x2cd   :  { %v531_v25 = vmul.f32 %v485_v19, %v1019_v44 }
 0x2ce   :  { %v520_v26 = vadd.f32 %v811_v5, %v519_v23 }
 0x2cf   :  { %v535_v28 = vadd.f32 %v532_v21, %v531_v25 }
 0x2d0   :  { %v524_v29 = vsel %vm523_vm0, %v811_v5, %v520_v26 }
 0x2d1   :  { %v529_v22 = vsel %vm526_vm1, %v528_v27, %v524_v29  ;;  %v536_v33 = vadd.f32 %v535_v28, %v533_v30 }
 0x2d2   :  { %v530_v32 = vmul.f32 0.03125, %v529_v22 }
 0x2d4   :  { %v534_v34 = vmul.f32 %v530_v32, %v1025_v45 }
 0x2d6   :  { %v537_v35 = vadd.f32 %v536_v33, %v534_v34 }
 0x2d8   :  { %v538_v36 = vrot.slane %v537_v35, 4 }
 0x2da   :  { %v539_v39 = vadd.f32 %v538_v36, %v537_v35 }
 0x2dc   :  { %v540_v41 = vrot.slane %v539_v39, 2 }
 0x2de   :  { %v541_v43 = vadd.f32 %v540_v41, %v539_v39 }
 0x2e0   :  { %v542_v44 = vrot.slane %v541_v43, 1 }
 0x2e2   :  { %v543_v46 = vadd.f32 %v542_v44, %v541_v43 }
 0x2e4   :  { %812 = vrcp.f32 %v543_v46  ;;  %v555_v37 = vand.u32 2147483648, %v543_v46  ;;  %v553_v50 = vand.u32 2147483647, %v543_v46  ;;  %vm549_vm3 = vweird.f32 %v543_v46 }
 0x2e6   :  { %v556_v51 = vor.u32 1.1754944e-38, %v555_v37  ;;  %vm554_vm5 = vcmp.eq.f32.partialorder %v553_v50, 8.507059e+37 }
 0x2ea   :  { %v813_v40 = vpop.eup %812 }
 0x2eb   :  { %v545_v48 = vmul.f32 %v813_v40, %v543_v46  ;;  %vm550_vm2 = vweird.f32 %v813_v40 }
 0x2ec   :  { %vm551_vm4 = vmor %vm549_vm3, %vm550_vm2 }
 0x2ed   :  { %v546_v38 = vsub.f32 1.0, %v545_v48 }
 0x2ef   :  { %v547_v49 = vmul.f32 %v813_v40, %v546_v38 }
 0x2f1   :  { %v548_v54 = vadd.f32 %v813_v40, %v547_v49 }
 0x2f3   :  { %v552_v45 = vsel %vm551_vm4, %v813_v40, %v548_v54 }
 0x2f4   :  { %v557_v52 = vsel %vm554_vm5, %v556_v51, %v552_v45 }
 0x2f5   :  { %v558_v53 = vmul.f32 %v557_v52, %v1009_v31 }
 0x2f7   :  { %v559_v55 = vand.u32 2147483647, %v558_v53 }
 0x2f9   :  { %vm560_vm6 = vcmp.eq.f32.partialorder %v559_v55, inf }
 0x2fa   :  { %v561_v42 = vsel %vm560_vm6, 0.0, %v558_v53 }
 0x2fb   :  { %562 = vmax.xlane.f32.xlu2 %v561_v42 }
 0x36e   :  { %v563_v56 = vpop.xlane.xlu2 %562 }
 0x36f   :  { %782 = vpush %v563_v56 }
 0x3a0   :  { %s783_s0 = spop %782 }
 0x3a1   :  { %v565_v57 = vstv %s783_s0 }
 0x3a2   :  { %v566_v58 = vsel %vm560_vm6, %v565_v57, %v558_v53 }
 0x3a3   :  { %v1040_v59 = vmul.f32 %v566_v58, %v533_v30  ;;  %v1042_v60 = vmul.f32 %v566_v58, %v532_v21  ;;  %v1044_v61 = vmul.f32 %v566_v58, %v531_v25  ;;  %v1049_v62 = vmul.f32 %v566_v58, %v534_v34 }
 0x3a5   :  { %575 = vadd.xlane.f32.xlu2 %v1040_v59  ;;  %573 = vadd.xlane.f32.xlu1 %v1042_v60 }
 0x3a6   :  { %571 = vadd.xlane.f32.xlu0 %v1044_v61 }
 0x3ae   :  { %577 = vadd.xlane.f32.xlu0 %v1049_v62 }
 0x418   :  { %v576_v63 = vpop.xlane.xlu2 %575  ;;  %v574_v0 = vpop.xlane.xlu1 %573 }
 0x419   :  { %814 = vrcp.f32 %v576_v63  ;;  %v572_v1 = vpop.xlane.xlu0 %571  ;;  %vm614_vm7 = vweird.f32 %v576_v63  ;;  %v603_v11 = vand.u32 2147483647, %v574_v0  ;;  %v605_v13 = vand.u32 2147483648, %v574_v0 }
 0x41a   :  { %816 = vrcp.f32 %v574_v0  ;;  %v620_v15 = vand.u32 2147483648, %v576_v63  ;;  %v590_v17 = vand.u32 2147483648, %v572_v1  ;;  %v588_v20 = vand.u32 2147483647, %v572_v1 }
 0x41b   :  { %818 = vrcp.f32 %v572_v1  ;;  %v618_v23 = vand.u32 2147483647, %v576_v63  ;;  %vm599_vm12 = vweird.f32 %v574_v0  ;;  %vm604_vm14 = vcmp.eq.f32.partialorder %v603_v11, 8.507059e+37 }
 0x41c   :  { %v606_v47 = vor.u32 1.1754944e-38, %v605_v13  ;;  %vm584_vm15 = vweird.f32 %v572_v1  ;;  %v591_v29 = vor.u32 1.1754944e-38, %v590_v17  ;;  %v621_v30 = vor.u32 1.1754944e-38, %v620_v15 }
 0x41d   :  { %vm589_vm1 = vcmp.eq.f32.partialorder %v588_v20, 8.507059e+37  ;;  %vm619_vm2 = vcmp.eq.f32.partialorder %v618_v23, 8.507059e+37 }
 0x41f   :  { %v815_v2 = vpop.eup %814 }
 0x420   :  { %v817_v3 = vpop.eup %816  ;;  %v610_v4 = vmul.f32 %v815_v2, %v576_v63  ;;  %vm615_vm8 = vweird.f32 %v815_v2 }
 0x421   :  { %v819_v5 = vpop.eup %818  ;;  %v595_v6 = vmul.f32 %v817_v3, %v574_v0  ;;  %v578_v7 = vpop.xlane.xlu0 %577  ;;  %vm600_vm9 = vweird.f32 %v817_v3  ;;  %vm1053_vm11 = vmor %vm614_vm7, %vm615_vm8 }
 0x422   :  { %v611_v8 = vsub.f32 1.0, %v610_v4  ;;  %v580_v9 = vmul.f32 %v819_v5, %v572_v1  ;;  %820 = vrcp.f32 %v578_v7  ;;  %vm585_vm10 = vweird.f32 %v819_v5  ;;  %vm601_vm13 = vmor %vm599_vm12, %vm600_vm9 }
 0x423   :  { %v596_v10 = vsub.f32 1.0, %v595_v6  ;;  %vm586_vm0 = vmor %vm584_vm15, %vm585_vm10  ;;  %v635_v43 = vand.u32 2147483648, %v578_v7  ;;  %v633_v40 = vand.u32 2147483647, %v578_v7  ;;  %vm629_vm4 = vweird.f32 %v578_v7 }
 0x424   :  { %v612_v12 = vmul.f32 %v815_v2, %v611_v8  ;;  %v581_v14 = vsub.f32 1.0, %v580_v9 }
 0x425   :  { %v597_v16 = vmul.f32 %v817_v3, %v596_v10  ;;  %v636_v49 = vor.u32 1.1754944e-38, %v635_v43  ;;  %vm634_vm6 = vcmp.eq.f32.partialorder %v633_v40, 8.507059e+37 }
 0x426   :  { %v613_v18 = vadd.f32 %v815_v2, %v612_v12  ;;  %v582_v19 = vmul.f32 %v819_v5, %v581_v14 }
 0x427   :  { %v598_v24 = vadd.f32 %v817_v3, %v597_v16 }
 0x428   :  { %v821_v25 = vpop.eup %820  ;;  %v583_v26 = vadd.f32 %v819_v5, %v582_v19  ;;  %v617_v27 = vsel %vm1053_vm11, %v815_v2, %v613_v18 }
 0x429   :  { %v602_v28 = vsel %vm601_vm13, %v817_v3, %v598_v24  ;;  %v625_v22 = vmul.f32 %v821_v25, %v578_v7  ;;  %v622_v39 = vsel %vm619_vm2, %v621_v30, %v617_v27  ;;  %vm630_vm3 = vweird.f32 %v821_v25 }
 0x42a   :  { %v607_v32 = vsel %vm604_vm14, %v606_v47, %v602_v28  ;;  %v587_v33 = vsel %vm586_vm0, %v819_v5, %v583_v26  ;;  %v623_v38 = vmul.f32 0.03125, %v622_v39  ;;  %vm631_vm5 = vmor %vm629_vm4, %vm630_vm3 }
 0x42b   :  { %v608_v34 = vmul.f32 0.03125, %v607_v32  ;;  %v592_v35 = vsel %vm589_vm1, %v591_v29, %v587_v33  ;;  %v626_v36 = vsub.f32 1.0, %v625_v22 }
 0x42c   :  { %v593_v41 = vmul.f32 0.03125, %v592_v35  ;;  %v641_v45 = vmul.f32 %v623_v38, %v1040_v59 }
 0x42d   :  { %v640_v44 = vmul.f32 %v608_v34, %v1042_v60  ;;  %v627_v46 = vmul.f32 %v821_v25, %v626_v36 }
 0x42e   :  { %v639_v48 = vmul.f32 %v593_v41, %v1044_v61 }
 0x42f   :  { %v628_v37 = vadd.f32 %v821_v25, %v627_v46 }
 0x430   :  { %v643_v50 = vadd.f32 %v640_v44, %v639_v48 }
 0x431   :  { %v632_v54 = vsel %vm631_vm5, %v821_v25, %v628_v37 }
 0x432   :  { %v637_v51 = vsel %vm634_vm6, %v636_v49, %v632_v54  ;;  %v644_v53 = vadd.f32 %v643_v50, %v641_v45 }
 0x433   :  { %v638_v52 = vmul.f32 0.03125, %v637_v51 }
 0x435   :  { %v642_v55 = vmul.f32 %v638_v52, %v1049_v62 }
 0x437   :  { %v645_v42 = vadd.f32 %v644_v53, %v642_v55 }
 0x439   :  { %v646_v56 = vrot.slane %v645_v42, 4 }
 0x43b   :  { %v647_v57 = vadd.f32 %v646_v56, %v645_v42 }
 0x43d   :  { %v648_v58 = vrot.slane %v647_v57, 2 }
 0x43f   :  { %v649_v60 = vadd.f32 %v648_v58, %v647_v57 }
 0x441   :  { %v650_v61 = vrot.slane %v649_v60, 1 }
 0x443   :  { %v651_v63 = vadd.f32 %v650_v61, %v649_v60 }
 0x445   :  { %822 = vrcp.f32 %v651_v63  ;;  %v663_v3 = vand.u32 2147483648, %v651_v63  ;;  %v661_v5 = vand.u32 2147483647, %v651_v63  ;;  %vm657_vm8 = vweird.f32 %v651_v63 }
 0x447   :  { %v664_v6 = vor.u32 1.1754944e-38, %v663_v3  ;;  %vm662_vm10 = vcmp.eq.f32.partialorder %v661_v5, 8.507059e+37 }
 0x44b   :  { %v823_v0 = vpop.eup %822 }
 0x44c   :  { %v653_v1 = vmul.f32 %v823_v0, %v651_v63  ;;  %vm658_vm7 = vweird.f32 %v823_v0 }
 0x44d   :  { %vm659_vm9 = vmor %vm657_vm8, %vm658_vm7 }
 0x44e   :  { %v654_v2 = vsub.f32 1.0, %v653_v1 }
 0x450   :  { %v655_v4 = vmul.f32 %v823_v0, %v654_v2 }
 0x452   :  { %v656_v59 = vadd.f32 %v823_v0, %v655_v4 }
 0x454   :  { %v660_v62 = vsel %vm659_vm9, %v823_v0, %v656_v59 }
 0x455   :  { %v665_v7 = vsel %vm662_vm10, %v664_v6, %v660_v62 }
 0x456   :  { %v666_v8 = vmul.f32 %v665_v7, %v1009_v31 }
 0x458   :  { %v667_v9 = vand.u32 2147483647, %v666_v8 }
 0x45a   :  { %vm668_vm11 = vcmp.eq.f32.partialorder %v667_v9, inf }
 0x45b   :  { %v669_v10 = vsel %vm668_vm11, 0.0, %v666_v8 }
 0x45c   :  { %670 = vmax.xlane.f32.xlu1 %v669_v10 }
 0x4cf   :  { %v671_v11 = vpop.xlane.xlu1 %670 }
 0x4d0   :  { %784 = vpush %v671_v11 }
 0x501   :  { %s785_s21 = spop %784 }
 0x502   :  { %v673_v12 = vstv %s785_s21 }
 0x503   :  { %v674_v13 = vsel %vm668_vm11, %v673_v12, %v666_v8 }
 0x504   :  { %v677_v14 = vmul.f32 %v674_v13, %v641_v45  ;;  %v676_v15 = vmul.f32 %v674_v13, %v640_v44  ;;  %v675_v16 = vmul.f32 %v674_v13, %v639_v48  ;;  %v1064_v17 = vmul.f32 %v674_v13, %v642_v55 }
 0x506   :  { %683 = vadd.xlane.f32.xlu1 %v677_v14  ;;  %681 = vadd.xlane.f32.xlu0 %v676_v15 }
 0x507   :  { %679 = vadd.xlane.f32.xlu2 %v675_v16 }
 0x50f   :  { %685 = vadd.xlane.f32.xlu2 %v1064_v17 }
 0x579   :  { %v684_v31 = vpop.xlane.xlu1 %683  ;;  %v682_v18 = vpop.xlane.xlu0 %681 }
 0x57a   :  { %824 = vrcp.f32 %v684_v31  ;;  %v680_v19 = vpop.xlane.xlu2 %679  ;;  %vm722_vm12 = vweird.f32 %v684_v31  ;;  %v726_v28 = vand.u32 2147483647, %v684_v31  ;;  %v728_v29 = vand.u32 2147483648, %v684_v31 }
 0x57b   :  { %826 = vrcp.f32 %v682_v18  ;;  %v711_v30 = vand.u32 2147483647, %v682_v18  ;;  %v713_v33 = vand.u32 2147483648, %v682_v18  ;;  %vm707_vm14 = vweird.f32 %v682_v18 }
 0x57c   :  { %828 = vrcp.f32 %v680_v19  ;;  %v698_v36 = vand.u32 2147483648, %v680_v19  ;;  %v696_v43 = vand.u32 2147483647, %v680_v19  ;;  %vm727_vm2 = vcmp.eq.f32.partialorder %v726_v28, 8.507059e+37 }
 0x57d   :  { %v729_v44 = vor.u32 1.1754944e-38, %v728_v29  ;;  %vm692_vm3 = vweird.f32 %v680_v19  ;;  %vm712_vm5 = vcmp.eq.f32.partialorder %v711_v30, 8.507059e+37  ;;  %v714_v38 = vor.u32 1.1754944e-38, %v713_v33 }
 0x57e   :  { %v699_v54 = vor.u32 1.1754944e-38, %v698_v36  ;;  %vm697_vm7 = vcmp.eq.f32.partialorder %v696_v43, 8.507059e+37 }
 0x580   :  { %v825_v20 = vpop.eup %824 }
 0x581   :  { %v827_v21 = vpop.eup %826  ;;  %v718_v23 = vmul.f32 %v825_v20, %v684_v31  ;;  %vm723_vm13 = vweird.f32 %v825_v20 }
 0x582   :  { %v829_v24 = vpop.eup %828  ;;  %v703_v25 = vmul.f32 %v827_v21, %v682_v18  ;;  %v686_v47 = vpop.xlane.xlu2 %685  ;;  %vm708_vm15 = vweird.f32 %v827_v21  ;;  %vm724_vm1 = vmor %vm722_vm12, %vm723_vm13 }
 0x583   :  { %v719_v26 = vsub.f32 1.0, %v718_v23  ;;  %v688_v27 = vmul.f32 %v829_v24, %v680_v19  ;;  %830 = vrcp.f32 %v686_v47  ;;  %vm693_vm0 = vweird.f32 %v829_v24  ;;  %vm709_vm4 = vmor %vm707_vm14, %vm708_vm15 }
 0x584   :  { %v704_v22 = vsub.f32 1.0, %v703_v25  ;;  %vm694_vm6 = vmor %vm692_vm3, %vm693_vm0  ;;  %v743_v58 = vand.u32 2147483648, %v686_v47  ;;  %v741_v61 = vand.u32 2147483647, %v686_v47  ;;  %vm737_vm9 = vweird.f32 %v686_v47 }
 0x585   :  { %v720_v32 = vmul.f32 %v825_v20, %v719_v26  ;;  %v689_v34 = vsub.f32 1.0, %v688_v27 }
 0x586   :  { %v705_v35 = vmul.f32 %v827_v21, %v704_v22  ;;  %v744_v0 = vor.u32 1.1754944e-38, %v743_v58  ;;  %vm742_vm11 = vcmp.eq.f32.partialorder %v741_v61, 8.507059e+37 }
 0x587   :  { %v721_v39 = vadd.f32 %v825_v20, %v720_v32  ;;  %v690_v41 = vmul.f32 %v829_v24, %v689_v34 }
 0x588   :  { %v706_v46 = vadd.f32 %v827_v21, %v705_v35 }
 0x589   :  { %v831_v40 = vpop.eup %830  ;;  %v725_v48 = vsel %vm724_vm1, %v825_v20, %v721_v39  ;;  %v691_v37 = vadd.f32 %v829_v24, %v690_v41 }
 0x58a   :  { %v730_v49 = vsel %vm727_vm2, %v729_v44, %v725_v48  ;;  %v710_v50 = vsel %vm709_vm4, %v827_v21, %v706_v46  ;;  %v733_v51 = vmul.f32 %v831_v40, %v686_v47  ;;  %vm738_vm8 = vweird.f32 %v831_v40 }
 0x58b   :  { %v749_v45 = vmul.f32 %v730_v49, %v677_v14  ;;  %v715_v52 = vsel %vm712_vm5, %v714_v38, %v710_v50  ;;  %v695_v53 = vsel %vm694_vm6, %v829_v24, %v691_v37  ;;  %vm739_vm10 = vmor %vm737_vm9, %vm738_vm8 }
 0x58c   :  { %v748_v55 = vmul.f32 %v715_v52, %v676_v15  ;;  %v700_v42 = vsel %vm697_vm7, %v699_v54, %v695_v53  ;;  %v734_v56 = vsub.f32 1.0, %v733_v51 }
 0x58d   :  { %753 = vst [vmem:[#allocation2 + $0x10] sm:$0xff] %v749_v45  ;;  %v747_v57 = vmul.f32 %v700_v42, %v675_v16 }
 0x58e   :  { %752 = vst [vmem:[#allocation2 + $0x8] sm:$0xff] %v748_v55  ;;  %v735_v60 = vmul.f32 %v831_v40, %v734_v56 }
 0x58f   :  { %751 = vst [vmem:[#allocation2] sm:$0xff] %v747_v57 }
 0x590   :  { %v736_v63 = vadd.f32 %v831_v40, %v735_v60 }
 0x592   :  { %v740_v1 = vsel %vm739_vm10, %v831_v40, %v736_v63 }
 0x593   :  { %v745_v2 = vsel %vm742_vm11, %v744_v0, %v740_v1 }
 0x594   :  { %v750_v3 = vmul.f32 %v745_v2, %v1064_v17 }
 0x596   :  { %754 = vst [vmem:[#allocation2 + $0x18] sm:$0xff] %v750_v3 }
 0x597   :  { %767 = dma.vmem_to_hbm [thread:$0]  %s760_s23, 512, %s762_s26, [#allocation3], %s861_s27, %s861_s27, %s862_s28  }
 0x598   :  { %856 = dma.done.wait [#allocation3], 512  }
 0x599   :  { %857 = vsyncadd [#allocation3], 4294966784 }
 0x59a   :  { %772 = vsyncpa [#allocation3], 1 }

</bundles_post_ra>
